<compile_context>
chip_gen: v7x
topology: tpu7x:2x2x1
jax: 0.10.0
libtpu: 0.0.40
codegen_flags: <defaults>
</compile_context>

<pallas_src>
import functools

import jax
import jax.numpy as jnp
from jax.experimental import pallas as pl
from jax.experimental.pallas import tpu as pltpu


def _round_up(n, m):
    return ((n + m - 1) // m) * m


# ----------------------------- kernel A: STFT -------------------------------- #

def _stft_kernel(chunks_ref, dft_ref, spec_ref, *, n_frames, hop, ratio):
    # chunks_ref: (n_chunks, hop) hop-sized chunks of the reflect-padded signal
    # dft_ref:    (n_fft, Fp)   windowed, normalized rDFT matrix (lane-padded)
    # spec_ref:   (n_frames, Fp) packed [Re | Im | 0] spectrum
    acc = None
    for j in range(ratio):                                   # r = n_fft / hop
        seg = chunks_ref[j:j + n_frames, :]                  # (Nf, hop) shifted view
        wj = dft_ref[j * hop:(j + 1) * hop, :]               # (hop, Fp)
        t = jnp.dot(seg, wj, preferred_element_type=jnp.float32)
        acc = t if acc is None else acc + t
    spec_ref[...] = acc


def stft_pallas(chunks, dft_fwd, n_frames):
    R, n_chunks, hop = chunks.shape
    n_fft, Fp = dft_fwd.shape
    kern = functools.partial(_stft_kernel, n_frames=n_frames, hop=hop,
                             ratio=n_fft // hop)
    return pl.pallas_call(
        kern,
        grid=(R,),
        in_specs=[pl.BlockSpec((None, n_chunks, hop), lambda s: (s, 0, 0)),
                  pl.BlockSpec((n_fft, Fp), lambda s: (0, 0))],
        out_specs=pl.BlockSpec((None, n_frames, Fp), lambda s: (s, 0, 0)),
        out_shape=jax.ShapeDtypeStruct((R, n_frames, Fp), jnp.float32),
        compiler_params=pltpu.CompilerParams(dimension_semantics=("parallel",)),
    )(chunks, dft_fwd)


# ---------- kernel B: BSFT mod + ReLU + 1x1 conv + iDFT + OLA + env ---------- #

def _bsft_istft_kernel(spec_ref, gamma_ref, beta_ref, m_ref, env_ref, out_ref,
                       ola_ref, *, c_in, c_out, n_frames, hop, ratio,
                       pad_chunks, out_chunks):
    # spec_ref : (C, Nf, Fp)       packed spectra of all input channels of one batch
    # gamma/beta: (C, Fp)          BSFT per-(channel, freq) modulation (lane-padded)
    # m_ref    : (C, Co, Fp, n_fft) conv_layer x inverse-DFT x synthesis-window
    # env_ref  : (out_chunks, hop)  precomputed 1 / OLA(window^2), already trimmed
    # out_ref  : (Co, out_chunks, hop) final signal in hop-chunk layout
    # ola_ref  : (Co, Nf+r-1, hop)  VMEM overlap-add accumulator
    frames = [None] * c_out
    for c in range(c_in):                                    # one channel live at a time
        g = gamma_ref[c:c + 1, :]                            # (1, Fp)
        b = beta_ref[c:c + 1, :]
        mod = jnp.maximum(spec_ref[c] * (1.0 + g) + b, 0.0)  # BSFT + ReLU, (Nf, Fp)
        for co in range(c_out):
            t = jnp.dot(mod, m_ref[c, co], preferred_element_type=jnp.float32)
            frames[co] = t if frames[co] is None else frames[co] + t

    # shift-add overlap-add into VMEM (hop | n_fft), then trim + envelope divide.
    ola_ref[...] = jnp.zeros_like(ola_ref)
    for co in range(c_out):
        fr = frames[co]                                      # (Nf, n_fft)
        for j in range(ratio):
            seg = fr[:, j * hop:(j + 1) * hop]               # (Nf, hop)
            ola_ref[co, j:j + n_frames, :] = ola_ref[co, j:j + n_frames, :] + seg
    out_ref[...] = ola_ref[:, pad_chunks:pad_chunks + out_chunks, :] * env_ref[...]


def bsft_istft_pallas(spec, gamma_p, beta_p, m_big, inv_env, *, n_fft, hop):
    B, C, n_frames, Fp = spec.shape
    _, Co, _, _ = m_big.shape
    ratio = n_fft // hop
    out_chunks, hop_e = inv_env.shape
    assert hop_e == hop and out_chunks == n_frames - 1
    pad_chunks = (n_fft // 2) // hop
    kern = functools.partial(_bsft_istft_kernel, c_in=C, c_out=Co,
                             n_frames=n_frames, hop=hop, ratio=ratio,
                             pad_chunks=pad_chunks, out_chunks=out_chunks)
    # TODO(synk): for very long signals tile Nf here with an (n_fft-hop) carry
    # ring instead of whole-utterance-per-step; fine at these sizes.
    return pl.pallas_call(
        kern,
        grid=(B,),
        in_specs=[pl.BlockSpec((None, C, n_frames, Fp), lambda b: (b, 0, 0, 0)),
                  pl.BlockSpec((None, C, Fp), lambda b: (b, 0, 0)),
                  pl.BlockSpec((None, C, Fp), lambda b: (b, 0, 0)),
                  pl.BlockSpec((C, Co, Fp, n_fft), lambda b: (0, 0, 0, 0)),
                  pl.BlockSpec((out_chunks, hop), lambda b: (0, 0))],
        out_specs=pl.BlockSpec((None, Co, out_chunks, hop), lambda b: (b, 0, 0, 0)),
        out_shape=jax.ShapeDtypeStruct((B, Co, out_chunks, hop), jnp.float32),
        scratch_shapes=[pltpu.VMEM((Co, n_frames + ratio - 1, hop), jnp.float32)],
        compiler_params=pltpu.CompilerParams(dimension_semantics=("parallel",)),
    )(spec, gamma_p, beta_p, m_big, inv_env)


# ------------------------------ helpers (glue) ------------------------------- #

def hann_window(n):
    k = jnp.arange(n, dtype=jnp.float32)
    return 0.5 * (1.0 - jnp.cos(2.0 * jnp.pi * k / n))       # torch.hann_window (periodic)


def make_dft_matrices(n_fft, window, lane_pad):
    """rFFT / irFFT matrices with hann window and torch `normalized=True` folded in."""
    Fr = n_fft // 2 + 1
    k = jnp.arange(n_fft, dtype=jnp.float32)[:, None]
    f = jnp.arange(Fr, dtype=jnp.float32)[None, :]
    ang = 2.0 * jnp.pi * f * k / n_fft                       # (n_fft, Fr)
    scale = 1.0 / jnp.sqrt(jnp.float32(n_fft))
    fwd = jnp.concatenate([window[:, None] * jnp.cos(ang) * scale,
                           -window[:, None] * jnp.sin(ang) * scale], axis=1)
    fwd = jnp.pad(fwd, ((0, 0), (0, lane_pad - 2 * Fr)))     # (n_fft, Fp), zero lanes
    fi = jnp.arange(Fr)
    a = jnp.where((fi == 0) | (fi == n_fft // 2), 1.0, 2.0).astype(jnp.float32)
    inv = jnp.concatenate([a[:, None] * jnp.cos(ang.T) * scale * window[None, :],
                           -2.0 * jnp.sin(ang.T) * scale * window[None, :]], axis=0)
    return fwd, inv                                          # inv: (2F, n_fft)


def make_inv_envelope(window, n_fft, hop, n_frames):
    """1 / OLA(window^2), trimmed like torch.istft(center=True), with nonzero guard."""
    w2 = window * window
    total = n_fft + hop * (n_frames - 1)
    env = jnp.zeros((total,), jnp.float32)
    for i in range(n_frames):
        env = env.at[i * hop:i * hop + n_fft].add(w2)
    pad = n_fft // 2
    out_len = hop * (n_frames - 1)
    seg = env[pad:pad + out_len]
    seg = jnp.where(seg > 1e-11, seg, 1.0)
    return (1.0 / seg).reshape(n_frames - 1, hop)


def _conv1d(x, w, b):
    """nn.Conv1d(kernel_size=3, padding=1) on the tiny band tensor, plain XLA."""
    y = jax.lax.conv_general_dilated(x, w, window_strides=(1,), padding=((1, 1),),
                                     dimension_numbers=("NCH", "OIH", "NCH"))
    return y + b[None, :, None]


# --------------------------- FourierUnit forward ----------------------------- #

def fourier_unit_forward(params, x, band, *, n_fft, hop, win):
    assert win == n_fft
    B, C, T = x.shape
    Fr = n_fft // 2 + 1
    Fp = _round_up(2 * Fr, 128)
    assert n_fft % hop == 0 and (n_fft // 2) % hop == 0
    ratio = n_fft // hop
    W = params["w_conv"]                                     # (2Co, 2C)
    Co2, C2 = W.shape
    assert C2 == 2 * C and Co2 == C2, "BSFT broadcast requires in_ch == out_ch"
    Co = Co2 // 2

    # ---- STFT input prep (center=True reflect pad; free chunk reshape) ----
    pad_t = n_fft // 2
    xf = x.reshape(B * C, T)
    xp = jnp.pad(xf, ((0, 0), (pad_t, pad_t)), mode="reflect")
    Lp = T + n_fft
    n_frames = 1 + (Lp - n_fft) // hop
    Lp_pad = _round_up(Lp, hop)
    if Lp_pad != Lp:
        xp = jnp.pad(xp, ((0, 0), (0, Lp_pad - Lp)))
    chunks = xp.reshape(B * C, Lp_pad // hop, hop)

    # ---- kernel A: framed forward DFT (normalized, windowed) ----
    spec = stft_pallas(chunks, params["dft_fwd"], n_frames)  # (B*C, Nf, Fp)
    spec = spec.reshape(B, C, n_frames, Fp)

    # ---- BSFT conditioning from band (tiny; plain XLA) ----
    actv = jax.nn.silu(_conv1d(band, params["w_shared"], params["b_shared"]))
    gamma = _conv1d(actv, params["w_gamma"], params["b_gamma"])   # (B, 2C, F)
    beta = _conv1d(actv, params["w_beta"], params["b_beta"])
    gamma_p = jnp.pad(gamma.reshape(B, C, 2 * Fr), ((0, 0), (0, 0), (0, Fp - 2 * Fr)))
    beta_p = jnp.pad(beta.reshape(B, C, 2 * Fr), ((0, 0), (0, 0), (0, Fp - 2 * Fr)))

    # ---- fold 1x1 conv_layer + irFFT + synthesis window into M[c, co] ----
    inv = params["dft_inv"]                                   # (2F, n_fft)
    Wr = W.reshape(Co, 2, C, 2)                               # [co, out-part, c, in-part]
    m_re = (jnp.einsum("oc,fn->cofn", Wr[:, 0, :, 0], inv[:Fr]) +
            jnp.einsum("oc,fn->cofn", Wr[:, 1, :, 0], inv[Fr:]))
    m_im = (jnp.einsum("oc,fn->cofn", Wr[:, 0, :, 1], inv[:Fr]) +
            jnp.einsum("oc,fn->cofn", Wr[:, 1, :, 1], inv[Fr:]))
    m_big = jnp.concatenate([m_re, m_im], axis=2)             # (C, Co, 2F, n_fft)
    m_big = jnp.pad(m_big, ((0, 0), (0, 0), (0, Fp - 2 * Fr), (0, 0)))

    # ---- kernel B: modulation + mix + iDFT + overlap-add + envelope ----
    y4 = bsft_istft_pallas(spec, gamma_p, beta_p, m_big, params["inv_env"],
                           n_fft=n_fft, hop=hop)               # (B, Co, Nf-1, hop)
    return y4.reshape(B, Co, (n_frames - 1) * hop)             # free contiguous reshape


# -------------------------------- param init --------------------------------- #

def init_params(key, in_ch, out_ch, nhidden, n_fft, hop, win_length, T):
    assert in_ch == out_ch
    Fr = n_fft // 2 + 1
    Fp = _round_up(2 * Fr, 128)
    window = hann_window(win_length)
    dft_fwd, dft_inv = make_dft_matrices(n_fft, window, Fp)
    n_frames = 1 + T // hop
    inv_env = make_inv_envelope(window, n_fft, hop, n_frames)
    ks = jax.random.split(key, 7)

    def kaiming(k, shape, fan_in):
        return jax.random.normal(k, shape, jnp.float32) * jnp.sqrt(2.0 / fan_in)

    return dict(
        dft_fwd=dft_fwd, dft_inv=dft_inv, inv_env=inv_env,
        # BSFT.mlp_shared: Conv1d(2, nhidden, 3, padding=1)
        w_shared=kaiming(ks[0], (nhidden, 2, 3), 2 * 3),
        b_shared=jax.random.normal(ks[1], (nhidden,), jnp.float32) * 0.01,
        # BSFT.mlp_gamma / mlp_beta: Conv1d(nhidden, 2*out_ch, 3, padding=1)
        w_gamma=kaiming(ks[2], (2 * out_ch, nhidden, 3), nhidden * 3),
        b_gamma=jax.random.normal(ks[3], (2 * out_ch,), jnp.float32) * 0.01,
        w_beta=kaiming(ks[4], (2 * out_ch, nhidden, 3), nhidden * 3),
        b_beta=jax.random.normal(ks[5], (2 * out_ch,), jnp.float32) * 0.01,
        # conv_layer: Conv2d(2*in_ch, 2*out_ch, kernel_size=1, bias=False)
        w_conv=kaiming(ks[6], (2 * out_ch, 2 * in_ch), 2 * in_ch),
    )


# ------------------------------------ main ----------------------------------- #

if __name__ == "__main__":
    B, C_in, C_out, nh = 2, 2, 2, 8             # in_channels == out_channels (BSFT broadcast)
    n_fft, hop, win = 64, 16, 64                # small, scaled-down STFT config
    T = 256                                     # divisible by hop -> exact round-trip length
    Fr = n_fft // 2 + 1

    key = jax.random.PRNGKey(0)
    k1, k2, k3 = jax.random.split(key, 3)
    x = jax.random.normal(k1, (B, C_in, T), jnp.float32)
    band = jax.random.normal(k2, (B, 2, Fr), jnp.float32)
    params = init_params(k3, C_in, C_out, nh, n_fft, hop, win, T)

    fwd = jax.jit(functools.partial(fourier_unit_forward, n_fft=n_fft, hop=hop, win=win))
    y = fwd(params, x, band)
    jax.block_until_ready(y)
    assert y.shape == (B, C_out, T), y.shape
    assert bool(jnp.all(jnp.isfinite(y)))
    print("KERNEL_OK")
</pallas_src>

<mosaic_0001>
module attributes {stable_mosaic.version = 11 : i64} {
  func.func @_stft_kernel(%arg0: i32, %arg1: memref<1x20x16xf32, #tpu.memory_space<vmem>>, %arg2: memref<64x128xf32, #tpu.memory_space<vmem>>, %arg3: memref<1x17x128xf32, #tpu.memory_space<vmem>>) attributes {dimension_semantics = [#tpu.dimension_semantics<parallel>], iteration_bounds = array<i64: 4>, scalar_prefetch = 0 : i64, scratch_operands = 0 : i64, tpu.core_type = #tpu.core_type<tc>, window_params = [{transform_indices = @transform_0, window_bounds = array<i64: 1, 20, 16>}, {pipeline_mode = #tpu.pipeline_mode<synchronous>, transform_indices = @transform_1, window_bounds = array<i64: 64, 128>}, {transform_indices = @transform_2, window_bounds = array<i64: 1, 17, 128>}]} {
    %c0 = arith.constant 0 : index
    %c0_0 = arith.constant 0 : index
    %c0_1 = arith.constant 0 : index
    %0 = vector.load %arg1[%c0, %c0_0, %c0_1] : memref<1x20x16xf32, #tpu.memory_space<vmem>>, vector<1x17x16xf32>
    %1 = vector.shape_cast %0 : vector<1x17x16xf32> to vector<17x16xf32>
    %c0_2 = arith.constant 0 : index
    %c0_3 = arith.constant 0 : index
    %2 = vector.load %arg2[%c0_2, %c0_3] : memref<64x128xf32, #tpu.memory_space<vmem>>, vector<16x128xf32>
    %cst = arith.constant dense<0.000000e+00> : vector<17x128xf32>
    %3 = tpu.matmul %1, %2, %cst {dimension_numbers = #tpu.dot_dimension_numbers<[1], [0], [0], [1], [0, 0, 1, 1], [], []>} : vector<17x16xf32>, vector<16x128xf32>, vector<17x128xf32> -> vector<17x128xf32>
    %c0_4 = arith.constant 0 : index
    %c1 = arith.constant 1 : index
    %c0_5 = arith.constant 0 : index
    %4 = vector.load %arg1[%c0_4, %c1, %c0_5] : memref<1x20x16xf32, #tpu.memory_space<vmem>>, vector<1x17x16xf32>
    %5 = vector.shape_cast %4 : vector<1x17x16xf32> to vector<17x16xf32>
    %c16 = arith.constant 16 : index
    %c0_6 = arith.constant 0 : index
    %6 = vector.load %arg2[%c16, %c0_6] : memref<64x128xf32, #tpu.memory_space<vmem>>, vector<16x128xf32>
    %cst_7 = arith.constant dense<0.000000e+00> : vector<17x128xf32>
    %7 = tpu.matmul %5, %6, %cst_7 {dimension_numbers = #tpu.dot_dimension_numbers<[1], [0], [0], [1], [0, 0, 1, 1], [], []>} : vector<17x16xf32>, vector<16x128xf32>, vector<17x128xf32> -> vector<17x128xf32>
    %8 = arith.addf %3, %7 : vector<17x128xf32>
    %c0_8 = arith.constant 0 : index
    %c2 = arith.constant 2 : index
    %c0_9 = arith.constant 0 : index
    %9 = vector.load %arg1[%c0_8, %c2, %c0_9] : memref<1x20x16xf32, #tpu.memory_space<vmem>>, vector<1x17x16xf32>
    %10 = vector.shape_cast %9 : vector<1x17x16xf32> to vector<17x16xf32>
    %c32 = arith.constant 32 : index
    %c0_10 = arith.constant 0 : index
    %11 = vector.load %arg2[%c32, %c0_10] : memref<64x128xf32, #tpu.memory_space<vmem>>, vector<16x128xf32>
    %cst_11 = arith.constant dense<0.000000e+00> : vector<17x128xf32>
    %12 = tpu.matmul %10, %11, %cst_11 {dimension_numbers = #tpu.dot_dimension_numbers<[1], [0], [0], [1], [0, 0, 1, 1], [], []>} : vector<17x16xf32>, vector<16x128xf32>, vector<17x128xf32> -> vector<17x128xf32>
    %13 = arith.addf %8, %12 : vector<17x128xf32>
    %c0_12 = arith.constant 0 : index
    %c3 = arith.constant 3 : index
    %c0_13 = arith.constant 0 : index
    %14 = vector.load %arg1[%c0_12, %c3, %c0_13] : memref<1x20x16xf32, #tpu.memory_space<vmem>>, vector<1x17x16xf32>
    %15 = vector.shape_cast %14 : vector<1x17x16xf32> to vector<17x16xf32>
    %c48 = arith.constant 48 : index
    %c0_14 = arith.constant 0 : index
    %16 = vector.load %arg2[%c48, %c0_14] : memref<64x128xf32, #tpu.memory_space<vmem>>, vector<16x128xf32>
    %cst_15 = arith.constant dense<0.000000e+00> : vector<17x128xf32>
    %17 = tpu.matmul %15, %16, %cst_15 {dimension_numbers = #tpu.dot_dimension_numbers<[1], [0], [0], [1], [0, 0, 1, 1], [], []>} : vector<17x16xf32>, vector<16x128xf32>, vector<17x128xf32> -> vector<17x128xf32>
    %18 = arith.addf %13, %17 : vector<17x128xf32>
    %c0_16 = arith.constant 0 : index
    %c0_17 = arith.constant 0 : index
    %c0_18 = arith.constant 0 : index
    %19 = vector.load %arg3[%c0_16, %c0_17, %c0_18] : memref<1x17x128xf32, #tpu.memory_space<vmem>>, vector<1x17x128xf32>
    %20 = vector.shape_cast %19 : vector<1x17x128xf32> to vector<17x128xf32>
    %21 = vector.shape_cast %18 : vector<17x128xf32> to vector<1x17x128xf32>
    tpu.vector_store %arg3[%c0_16, %c0_17, %c0_18], %21 {strides = array<i32>} : memref<1x17x128xf32, #tpu.memory_space<vmem>>, vector<1x17x128xf32>,
    return
  }
  func.func @transform_0(%arg0: i32) -> (i32, i32, i32) {
    %c0_i32 = arith.constant 0 : i32
    %c0_i32_0 = arith.constant 0 : i32
    %c0_i32_1 = arith.constant 0 : i32
    return %arg0, %c0_i32, %c0_i32_0 : i32, i32, i32
  }
  func.func @transform_1(%arg0: i32) -> (i32, i32) {
    %c0_i32 = arith.constant 0 : i32
    %c0_i32_0 = arith.constant 0 : i32
    %c0_i32_1 = arith.constant 0 : i32
    return %c0_i32, %c0_i32_0 : i32, i32
  }
  func.func @transform_2(%arg0: i32) -> (i32, i32, i32) {
    %c0_i32 = arith.constant 0 : i32
    %c0_i32_0 = arith.constant 0 : i32
    %c0_i32_1 = arith.constant 0 : i32
    return %arg0, %c0_i32, %c0_i32_0 : i32, i32, i32
  }
}

module attributes {stable_mosaic.version = 11 : i64} {
  func.func @_bsft_istft_kernel(%arg0: i32, %arg1: memref<1x2x17x128xf32, #tpu.memory_space<vmem>>, %arg2: memref<1x2x128xf32, #tpu.memory_space<vmem>>, %arg3: memref<1x2x128xf32, #tpu.memory_space<vmem>>, %arg4: memref<2x2x128x64xf32, #tpu.memory_space<vmem>>, %arg5: memref<16x16xf32, #tpu.memory_space<vmem>>, %arg6: memref<1x2x16x16xf32, #tpu.memory_space<vmem>>, %arg7: memref<2x20x16xf32, #tpu.memory_space<vmem>>) attributes {dimension_semantics = [#tpu.dimension_semantics<parallel>], iteration_bounds = array<i64: 2>, scalar_prefetch = 0 : i64, scratch_operands = 1 : i64, tpu.core_type = #tpu.core_type<tc>, window_params = [{transform_indices = @transform_0, window_bounds = array<i64: 1, 2, 17, 128>}, {transform_indices = @transform_1, window_bounds = array<i64: 1, 2, 128>}, {transform_indices = @transform_2, window_bounds = array<i64: 1, 2, 128>}, {pipeline_mode = #tpu.pipeline_mode<synchronous>, transform_indices = @transform_3, window_bounds = array<i64: 2, 2, 128, 64>}, {pipeline_mode = #tpu.pipeline_mode<synchronous>, transform_indices = @transform_4, window_bounds = array<i64: 16, 16>}, {transform_indices = @transform_5, window_bounds = array<i64: 1, 2, 16, 16>}]} {
    %c0 = arith.constant 0 : index
    %c0_0 = arith.constant 0 : index
    %c0_1 = arith.constant 0 : index
    %0 = vector.load %arg2[%c0, %c0_0, %c0_1] : memref<1x2x128xf32, #tpu.memory_space<vmem>>, vector<1x1x128xf32>
    %1 = vector.shape_cast %0 : vector<1x1x128xf32> to vector<1x128xf32>
    %c0_2 = arith.constant 0 : index
    %c0_3 = arith.constant 0 : index
    %c0_4 = arith.constant 0 : index
    %2 = vector.load %arg3[%c0_2, %c0_3, %c0_4] : memref<1x2x128xf32, #tpu.memory_space<vmem>>, vector<1x1x128xf32>
    %3 = vector.shape_cast %2 : vector<1x1x128xf32> to vector<1x128xf32>
    %c0_5 = arith.constant 0 : index
    %c0_6 = arith.constant 0 : index
    %c0_7 = arith.constant 0 : index
    %c0_8 = arith.constant 0 : index
    %4 = vector.load %arg1[%c0_5, %c0_6, %c0_7, %c0_8] : memref<1x2x17x128xf32, #tpu.memory_space<vmem>>, vector<1x1x17x128xf32>
    %5 = vector.shape_cast %4 : vector<1x1x17x128xf32> to vector<17x128xf32>
    %cst = arith.constant 1.000000e+00 : f32
    %6 = vector.broadcast %cst : f32 to vector<1x128xf32>
    %7 = arith.addf %6, %1 : vector<1x128xf32>
    %8 = vector.broadcast %7 : vector<1x128xf32> to vector<17x128xf32>
    %9 = arith.mulf %5, %8 : vector<17x128xf32>
    %10 = vector.broadcast %3 : vector<1x128xf32> to vector<17x128xf32>
    %11 = arith.addf %9, %10 : vector<17x128xf32>
    %cst_9 = arith.constant 0.000000e+00 : f32
    %12 = vector.broadcast %cst_9 : f32 to vector<17x128xf32>
    %13 = arith.maximumf %11, %12 : vector<17x128xf32>
    %c0_10 = arith.constant 0 : index
    %c0_11 = arith.constant 0 : index
    %c0_12 = arith.constant 0 : index
    %c0_13 = arith.constant 0 : index
    %14 = vector.load %arg4[%c0_10, %c0_11, %c0_12, %c0_13] : memref<2x2x128x64xf32, #tpu.memory_space<vmem>>, vector<1x1x128x64xf32>
    %15 = vector.shape_cast %14 : vector<1x1x128x64xf32> to vector<128x64xf32>
    %cst_14 = arith.constant dense<0.000000e+00> : vector<17x64xf32>
    %16 = tpu.matmul %13, %15, %cst_14 {dimension_numbers = #tpu.dot_dimension_numbers<[1], [0], [0], [1], [0, 0, 1, 1], [], []>} : vector<17x128xf32>, vector<128x64xf32>, vector<17x64xf32> -> vector<17x64xf32>
    %c0_15 = arith.constant 0 : index
    %c1 = arith.constant 1 : index
    %c0_16 = arith.constant 0 : index
    %c0_17 = arith.constant 0 : index
    %17 = vector.load %arg4[%c0_15, %c1, %c0_16, %c0_17] : memref<2x2x128x64xf32, #tpu.memory_space<vmem>>, vector<1x1x128x64xf32>
    %18 = vector.shape_cast %17 : vector<1x1x128x64xf32> to vector<128x64xf32>
    %cst_18 = arith.constant dense<0.000000e+00> : vector<17x64xf32>
    %19 = tpu.matmul %13, %18, %cst_18 {dimension_numbers = #tpu.dot_dimension_numbers<[1], [0], [0], [1], [0, 0, 1, 1], [], []>} : vector<17x128xf32>, vector<128x64xf32>, vector<17x64xf32> -> vector<17x64xf32>
    %c0_19 = arith.constant 0 : index
    %c1_20 = arith.constant 1 : index
    %c0_21 = arith.constant 0 : index
    %20 = vector.load %arg2[%c0_19, %c1_20, %c0_21] : memref<1x2x128xf32, #tpu.memory_space<vmem>>, vector<1x1x128xf32>
    %21 = vector.shape_cast %20 : vector<1x1x128xf32> to vector<1x128xf32>
    %c0_22 = arith.constant 0 : index
    %c1_23 = arith.constant 1 : index
    %c0_24 = arith.constant 0 : index
    %22 = vector.load %arg3[%c0_22, %c1_23, %c0_24] : memref<1x2x128xf32, #tpu.memory_space<vmem>>, vector<1x1x128xf32>
    %23 = vector.shape_cast %22 : vector<1x1x128xf32> to vector<1x128xf32>
    %c0_25 = arith.constant 0 : index
    %c1_26 = arith.constant 1 : index
    %c0_27 = arith.constant 0 : index
    %c0_28 = arith.constant 0 : index
    %24 = vector.load %arg1[%c0_25, %c1_26, %c0_27, %c0_28] : memref<1x2x17x128xf32, #tpu.memory_space<vmem>>, vector<1x1x17x128xf32>
    %25 = vector.shape_cast %24 : vector<1x1x17x128xf32> to vector<17x128xf32>
    %cst_29 = arith.constant 1.000000e+00 : f32
    %26 = vector.broadcast %cst_29 : f32 to vector<1x128xf32>
    %27 = arith.addf %26, %21 : vector<1x128xf32>
    %28 = vector.broadcast %27 : vector<1x128xf32> to vector<17x128xf32>
    %29 = arith.mulf %25, %28 : vector<17x128xf32>
    %30 = vector.broadcast %23 : vector<1x128xf32> to vector<17x128xf32>
    %31 = arith.addf %29, %30 : vector<17x128xf32>
    %cst_30 = arith.constant 0.000000e+00 : f32
    %32 = vector.broadcast %cst_30 : f32 to vector<17x128xf32>
    %33 = arith.maximumf %31, %32 : vector<17x128xf32>
    %c1_31 = arith.constant 1 : index
    %c0_32 = arith.constant 0 : index
    %c0_33 = arith.constant 0 : index
    %c0_34 = arith.constant 0 : index
    %34 = vector.load %arg4[%c1_31, %c0_32, %c0_33, %c0_34] : memref<2x2x128x64xf32, #tpu.memory_space<vmem>>, vector<1x1x128x64xf32>
    %35 = vector.shape_cast %34 : vector<1x1x128x64xf32> to vector<128x64xf32>
    %cst_35 = arith.constant dense<0.000000e+00> : vector<17x64xf32>
    %36 = tpu.matmul %33, %35, %cst_35 {dimension_numbers = #tpu.dot_dimension_numbers<[1], [0], [0], [1], [0, 0, 1, 1], [], []>} : vector<17x128xf32>, vector<128x64xf32>, vector<17x64xf32> -> vector<17x64xf32>
    %37 = arith.addf %16, %36 : vector<17x64xf32>
    %c1_36 = arith.constant 1 : index
    %c1_37 = arith.constant 1 : index
    %c0_38 = arith.constant 0 : index
    %c0_39 = arith.constant 0 : index
    %38 = vector.load %arg4[%c1_36, %c1_37, %c0_38, %c0_39] : memref<2x2x128x64xf32, #tpu.memory_space<vmem>>, vector<1x1x128x64xf32>
    %39 = vector.shape_cast %38 : vector<1x1x128x64xf32> to vector<128x64xf32>
    %cst_40 = arith.constant dense<0.000000e+00> : vector<17x64xf32>
    %40 = tpu.matmul %33, %39, %cst_40 {dimension_numbers = #tpu.dot_dimension_numbers<[1], [0], [0], [1], [0, 0, 1, 1], [], []>} : vector<17x128xf32>, vector<128x64xf32>, vector<17x64xf32> -> vector<17x64xf32>
    %41 = arith.addf %19, %40 : vector<17x64xf32>
    %cst_41 = arith.constant 0.000000e+00 : f32
    %42 = vector.broadcast %cst_41 : f32 to vector<2x20x16xf32>
    %c0_42 = arith.constant 0 : index
    %c0_43 = arith.constant 0 : index
    %c0_44 = arith.constant 0 : index
    %43 = vector.load %arg7[%c0_42, %c0_43, %c0_44] : memref<2x20x16xf32, #tpu.memory_space<vmem>>, vector<2x20x16xf32>
    tpu.vector_store %arg7[%c0_42, %c0_43, %c0_44], %42 {strides = array<i32>} : memref<2x20x16xf32, #tpu.memory_space<vmem>>, vector<2x20x16xf32>,
    %44 = vector.extract_strided_slice %37 {offsets = [0, 0], sizes = [17, 16], strides = [1, 1]} : vector<17x64xf32> to vector<17x16xf32>
    %c0_45 = arith.constant 0 : index
    %c0_46 = arith.constant 0 : index
    %c0_47 = arith.constant 0 : index
    %45 = vector.load %arg7[%c0_45, %c0_46, %c0_47] : memref<2x20x16xf32, #tpu.memory_space<vmem>>, vector<1x17x16xf32>
    %46 = vector.shape_cast %45 : vector<1x17x16xf32> to vector<17x16xf32>
    %47 = arith.addf %46, %44 : vector<17x16xf32>
    %c0_48 = arith.constant 0 : index
    %c0_49 = arith.constant 0 : index
    %c0_50 = arith.constant 0 : index
    %48 = vector.load %arg7[%c0_48, %c0_49, %c0_50] : memref<2x20x16xf32, #tpu.memory_space<vmem>>, vector<1x17x16xf32>
    %49 = vector.shape_cast %48 : vector<1x17x16xf32> to vector<17x16xf32>
    %50 = vector.shape_cast %47 : vector<17x16xf32> to vector<1x17x16xf32>
    tpu.vector_store %arg7[%c0_48, %c0_49, %c0_50], %50 {strides = array<i32>} : memref<2x20x16xf32, #tpu.memory_space<vmem>>, vector<1x17x16xf32>,
    %51 = vector.extract_strided_slice %37 {offsets = [0, 16], sizes = [17, 16], strides = [1, 1]} : vector<17x64xf32> to vector<17x16xf32>
    %c0_51 = arith.constant 0 : index
    %c1_52 = arith.constant 1 : index
    %c0_53 = arith.constant 0 : index
    %52 = vector.load %arg7[%c0_51, %c1_52, %c0_53] : memref<2x20x16xf32, #tpu.memory_space<vmem>>, vector<1x17x16xf32>
    %53 = vector.shape_cast %52 : vector<1x17x16xf32> to vector<17x16xf32>
    %54 = arith.addf %53, %51 : vector<17x16xf32>
    %c0_54 = arith.constant 0 : index
    %c1_55 = arith.constant 1 : index
    %c0_56 = arith.constant 0 : index
    %55 = vector.load %arg7[%c0_54, %c1_55, %c0_56] : memref<2x20x16xf32, #tpu.memory_space<vmem>>, vector<1x17x16xf32>
    %56 = vector.shape_cast %55 : vector<1x17x16xf32> to vector<17x16xf32>
    %57 = vector.shape_cast %54 : vector<17x16xf32> to vector<1x17x16xf32>
    tpu.vector_store %arg7[%c0_54, %c1_55, %c0_56], %57 {strides = array<i32>} : memref<2x20x16xf32, #tpu.memory_space<vmem>>, vector<1x17x16xf32>,
    %58 = vector.extract_strided_slice %37 {offsets = [0, 32], sizes = [17, 16], strides = [1, 1]} : vector<17x64xf32> to vector<17x16xf32>
    %c0_57 = arith.constant 0 : index
    %c2 = arith.constant 2 : index
    %c0_58 = arith.constant 0 : index
    %59 = vector.load %arg7[%c0_57, %c2, %c0_58] : memref<2x20x16xf32, #tpu.memory_space<vmem>>, vector<1x17x16xf32>
    %60 = vector.shape_cast %59 : vector<1x17x16xf32> to vector<17x16xf32>
    %61 = arith.addf %60, %58 : vector<17x16xf32>
    %c0_59 = arith.constant 0 : index
    %c2_60 = arith.constant 2 : index
    %c0_61 = arith.constant 0 : index
    %62 = vector.load %arg7[%c0_59, %c2_60, %c0_61] : memref<2x20x16xf32, #tpu.memory_space<vmem>>, vector<1x17x16xf32>
    %63 = vector.shape_cast %62 : vector<1x17x16xf32> to vector<17x16xf32>
    %64 = vector.shape_cast %61 : vector<17x16xf32> to vector<1x17x16xf32>
    tpu.vector_store %arg7[%c0_59, %c2_60, %c0_61], %64 {strides = array<i32>} : memref<2x20x16xf32, #tpu.memory_space<vmem>>, vector<1x17x16xf32>,
    %65 = vector.extract_strided_slice %37 {offsets = [0, 48], sizes = [17, 16], strides = [1, 1]} : vector<17x64xf32> to vector<17x16xf32>
    %c0_62 = arith.constant 0 : index
    %c3 = arith.constant 3 : index
    %c0_63 = arith.constant 0 : index
    %66 = vector.load %arg7[%c0_62, %c3, %c0_63] : memref<2x20x16xf32, #tpu.memory_space<vmem>>, vector<1x17x16xf32>
    %67 = vector.shape_cast %66 : vector<1x17x16xf32> to vector<17x16xf32>
    %68 = arith.addf %67, %65 : vector<17x16xf32>
    %c0_64 = arith.constant 0 : index
    %c3_65 = arith.constant 3 : index
    %c0_66 = arith.constant 0 : index
    %69 = vector.load %arg7[%c0_64, %c3_65, %c0_66] : memref<2x20x16xf32, #tpu.memory_space<vmem>>, vector<1x17x16xf32>
    %70 = vector.shape_cast %69 : vector<1x17x16xf32> to vector<17x16xf32>
    %71 = vector.shape_cast %68 : vector<17x16xf32> to vector<1x17x16xf32>
    tpu.vector_store %arg7[%c0_64, %c3_65, %c0_66], %71 {strides = array<i32>} : memref<2x20x16xf32, #tpu.memory_space<vmem>>, vector<1x17x16xf32>,
    %72 = vector.extract_strided_slice %41 {offsets = [0, 0], sizes = [17, 16], strides = [1, 1]} : vector<17x64xf32> to vector<17x16xf32>
    %c1_67 = arith.constant 1 : index
    %c0_68 = arith.constant 0 : index
    %c0_69 = arith.constant 0 : index
    %73 = vector.load %arg7[%c1_67, %c0_68, %c0_69] : memref<2x20x16xf32, #tpu.memory_space<vmem>>, vector<1x17x16xf32>
    %74 = vector.shape_cast %73 : vector<1x17x16xf32> to vector<17x16xf32>
    %75 = arith.addf %74, %72 : vector<17x16xf32>
    %c1_70 = arith.constant 1 : index
    %c0_71 = arith.constant 0 : index
    %c0_72 = arith.constant 0 : index
    %76 = vector.load %arg7[%c1_70, %c0_71, %c0_72] : memref<2x20x16xf32, #tpu.memory_space<vmem>>, vector<1x17x16xf32>
    %77 = vector.shape_cast %76 : vector<1x17x16xf32> to vector<17x16xf32>
    %78 = vector.shape_cast %75 : vector<17x16xf32> to vector<1x17x16xf32>
    tpu.vector_store %arg7[%c1_70, %c0_71, %c0_72], %78 {strides = array<i32>} : memref<2x20x16xf32, #tpu.memory_space<vmem>>, vector<1x17x16xf32>,
    %79 = vector.extract_strided_slice %41 {offsets = [0, 16], sizes = [17, 16], strides = [1, 1]} : vector<17x64xf32> to vector<17x16xf32>
    %c1_73 = arith.constant 1 : index
    %c1_74 = arith.constant 1 : index
    %c0_75 = arith.constant 0 : index
    %80 = vector.load %arg7[%c1_73, %c1_74, %c0_75] : memref<2x20x16xf32, #tpu.memory_space<vmem>>, vector<1x17x16xf32>
    %81 = vector.shape_cast %80 : vector<1x17x16xf32> to vector<17x16xf32>
    %82 = arith.addf %81, %79 : vector<17x16xf32>
    %c1_76 = arith.constant 1 : index
    %c1_77 = arith.constant 1 : index
    %c0_78 = arith.constant 0 : index
    %83 = vector.load %arg7[%c1_76, %c1_77, %c0_78] : memref<2x20x16xf32, #tpu.memory_space<vmem>>, vector<1x17x16xf32>
    %84 = vector.shape_cast %83 : vector<1x17x16xf32> to vector<17x16xf32>
    %85 = vector.shape_cast %82 : vector<17x16xf32> to vector<1x17x16xf32>
    tpu.vector_store %arg7[%c1_76, %c1_77, %c0_78], %85 {strides = array<i32>} : memref<2x20x16xf32, #tpu.memory_space<vmem>>, vector<1x17x16xf32>,
    %86 = vector.extract_strided_slice %41 {offsets = [0, 32], sizes = [17, 16], strides = [1, 1]} : vector<17x64xf32> to vector<17x16xf32>
    %c1_79 = arith.constant 1 : index
    %c2_80 = arith.constant 2 : index
    %c0_81 = arith.constant 0 : index
    %87 = vector.load %arg7[%c1_79, %c2_80, %c0_81] : memref<2x20x16xf32, #tpu.memory_space<vmem>>, vector<1x17x16xf32>
    %88 = vector.shape_cast %87 : vector<1x17x16xf32> to vector<17x16xf32>
    %89 = arith.addf %88, %86 : vector<17x16xf32>
    %c1_82 = arith.constant 1 : index
    %c2_83 = arith.constant 2 : index
    %c0_84 = arith.constant 0 : index
    %90 = vector.load %arg7[%c1_82, %c2_83, %c0_84] : memref<2x20x16xf32, #tpu.memory_space<vmem>>, vector<1x17x16xf32>
    %91 = vector.shape_cast %90 : vector<1x17x16xf32> to vector<17x16xf32>
    %92 = vector.shape_cast %89 : vector<17x16xf32> to vector<1x17x16xf32>
    tpu.vector_store %arg7[%c1_82, %c2_83, %c0_84], %92 {strides = array<i32>} : memref<2x20x16xf32, #tpu.memory_space<vmem>>, vector<1x17x16xf32>,
    %93 = vector.extract_strided_slice %41 {offsets = [0, 48], sizes = [17, 16], strides = [1, 1]} : vector<17x64xf32> to vector<17x16xf32>
    %c1_85 = arith.constant 1 : index
    %c3_86 = arith.constant 3 : index
    %c0_87 = arith.constant 0 : index
    %94 = vector.load %arg7[%c1_85, %c3_86, %c0_87] : memref<2x20x16xf32, #tpu.memory_space<vmem>>, vector<1x17x16xf32>
    %95 = vector.shape_cast %94 : vector<1x17x16xf32> to vector<17x16xf32>
    %96 = arith.addf %95, %93 : vector<17x16xf32>
    %c1_88 = arith.constant 1 : index
    %c3_89 = arith.constant 3 : index
    %c0_90 = arith.constant 0 : index
    %97 = vector.load %arg7[%c1_88, %c3_89, %c0_90] : memref<2x20x16xf32, #tpu.memory_space<vmem>>, vector<1x17x16xf32>
    %98 = vector.shape_cast %97 : vector<1x17x16xf32> to vector<17x16xf32>
    %99 = vector.shape_cast %96 : vector<17x16xf32> to vector<1x17x16xf32>
    tpu.vector_store %arg7[%c1_88, %c3_89, %c0_90], %99 {strides = array<i32>} : memref<2x20x16xf32, #tpu.memory_space<vmem>>, vector<1x17x16xf32>,
    %c0_91 = arith.constant 0 : index
    %c2_92 = arith.constant 2 : index
    %c0_93 = arith.constant 0 : index
    %100 = vector.load %arg7[%c0_91, %c2_92, %c0_93] : memref<2x20x16xf32, #tpu.memory_space<vmem>>, vector<2x16x16xf32>
    %c0_94 = arith.constant 0 : index
    %c0_95 = arith.constant 0 : index
    %101 = vector.load %arg5[%c0_94, %c0_95] : memref<16x16xf32, #tpu.memory_space<vmem>>, vector<16x16xf32>
    %102 = vector.shape_cast %101 : vector<16x16xf32> to vector<1x16x16xf32>
    %103 = vector.broadcast %102 : vector<1x16x16xf32> to vector<2x16x16xf32>
    %104 = arith.mulf %100, %103 : vector<2x16x16xf32>
    %c0_96 = arith.constant 0 : index
    %c0_97 = arith.constant 0 : index
    %c0_98 = arith.constant 0 : index
    %c0_99 = arith.constant 0 : index
    %105 = vector.load %arg6[%c0_96, %c0_97, %c0_98, %c0_99] : memref<1x2x16x16xf32, #tpu.memory_space<vmem>>, vector<1x2x16x16xf32>
    %106 = vector.shape_cast %105 : vector<1x2x16x16xf32> to vector<2x16x16xf32>
    %107 = vector.shape_cast %104 : vector<2x16x16xf32> to vector<1x2x16x16xf32>
    tpu.vector_store %arg6[%c0_96, %c0_97, %c0_98, %c0_99], %107 {strides = array<i32>} : memref<1x2x16x16xf32, #tpu.memory_space<vmem>>, vector<1x2x16x16xf32>,
    return
  }
  func.func @transform_0(%arg0: i32) -> (i32, i32, i32, i32) {
    %c0_i32 = arith.constant 0 : i32
    %c0_i32_0 = arith.constant 0 : i32
    %c0_i32_1 = arith.constant 0 : i32
    %c0_i32_2 = arith.constant 0 : i32
    return %arg0, %c0_i32, %c0_i32_0, %c0_i32_1 : i32, i32, i32, i32
  }
  func.func @transform_1(%arg0: i32) -> (i32, i32, i32) {
    %c0_i32 = arith.constant 0 : i32
    %c0_i32_0 = arith.constant 0 : i32
    %c0_i32_1 = arith.constant 0 : i32
    return %arg0, %c0_i32, %c0_i32_0 : i32, i32, i32
  }
  func.func @transform_2(%arg0: i32) -> (i32, i32, i32) {
    %c0_i32 = arith.constant 0 : i32
    %c0_i32_0 = arith.constant 0 : i32
    %c0_i32_1 = arith.constant 0 : i32
    return %arg0, %c0_i32, %c0_i32_0 : i32, i32, i32
  }
  func.func @transform_3(%arg0: i32) -> (i32, i32, i32, i32) {
    %c0_i32 = arith.constant 0 : i32
    %c0_i32_0 = arith.constant 0 : i32
    %c0_i32_1 = arith.constant 0 : i32
    %c0_i32_2 = arith.constant 0 : i32
    %c0_i32_3 = arith.constant 0 : i32
    return %c0_i32, %c0_i32_0, %c0_i32_1, %c0_i32_2 : i32, i32, i32, i32
  }
  func.func @transform_4(%arg0: i32) -> (i32, i32) {
    %c0_i32 = arith.constant 0 : i32
    %c0_i32_0 = arith.constant 0 : i32
    %c0_i32_1 = arith.constant 0 : i32
    return %c0_i32, %c0_i32_0 : i32, i32
  }
  func.func @transform_5(%arg0: i32) -> (i32, i32, i32, i32) {
    %c0_i32 = arith.constant 0 : i32
    %c0_i32_0 = arith.constant 0 : i32
    %c0_i32_1 = arith.constant 0 : i32
    %c0_i32_2 = arith.constant 0 : i32
    return %arg0, %c0_i32, %c0_i32_0, %c0_i32_1 : i32, i32, i32, i32
  }
}

</mosaic_0001>

<bundles_post_ra>
// kernel: fourier_unit_forward.2
= control target key start
LH: loop header
LB: loop body
LE: loop exit
PB: predicated region body
PF: predicated region fallthrough
CT: control target
= control target key end

     0   :  { %s743_s9 = smov 0   ;;  %s829_s0 = inlined_call_operand.vmem [shape: f32[4,20,16], index: 0, kind: input, shape index: {}]   ;;  %s830_s1 = inlined_call_operand.vmem [shape: f32[64,128], index: 1, kind: input, shape index: {}]   ;;  %s831_s2 = inlined_call_operand.vmem [shape: f32[4,17,128], index: 2, kind: output, shape index: {}]  }
   0x1 LB: > { %s585_s10 = sadd.s32 4294967295, %s723_s9   ;;  %p589_p0 = scmp.ge.s32.totalorder %s723_s9, 1  ;;  %s723_s9 = sphi %s743_s9, %s12_s9  }
   0x2   : > { %p112_p1 = scmp.lt.s32.totalorder %s723_s9, 5 }
   0x4   : > { %p113_p2 = pnand %p589_p0, %p112_p1 }
   0x5   : > { %v152_v0 = vld [vmem:[%s830_s1 + $0x10] sm:$0xff] (!%p113_p2)  ;;  %v153_v1 = vld [vmem:[%s830_s1 + $0x18] sm:$0xff] (!%p113_p2)  ;;  %v336_v2 = vld [vmem:[%s830_s1 + $0x20] sm:$0xff] (!%p113_p2)  ;;  %v725_v3 = vmov (!%p113_p2), 0.0|0.0   ;;  %p134_p3 = scmp.lt.s32.totalorder (!%p113_p2), %s585_s10, 3  ;;  %vm726_vm0 = vmmov (!%p113_p2), 0  }
   0x6   : > { %116 = sbr.rel (%p113_p2) target bundleno = 254 (0xfe), region = 28  ;;  %678 = vmatprep.subr.bf16.mxu1 (!%p113_p2), %v725_v3  ;;  %684 = vmatprep.subr.bf16.mxu0 (!%p113_p2), %v725_v3  ;;  %v679_v4 = vpack.c.bf16 (!%p113_p2), %v153_v1, %v152_v0  ;;  %v337_v5 = vld [vmem:[%s830_s1 + $0x28] sm:$0xff] (!%p113_p2)  ;;  %v727_v7 = vmov (!%p113_p2), 0.0   ;;  %v147_v8 = vld [vmem:[%s830_s1] sm:$0xff] (!%p113_p2)  ;;  %v433_v10 = vld [vmem:[%s830_s1 + $0x30] sm:$0xff] (!%p113_p2)  ;;  %vm154_vm1 = vcmask (!%p113_p2), 130048  }
   0x7   : > { %v685_v6 = vpack.c.bf16 (!%p113_p2), %v337_v5, %v336_v2  ;;  %630 = vmatprep.mubr.msk.f32.mxu1 (!%p113_p2), %vm726_vm0, %v727_v7  ;;  %656 = vmatprep.mubr.msk.f32.mxu0 (!%p113_p2), %vm726_vm0, %v727_v7  ;;  %v148_v9 = vld [vmem:[%s830_s1 + $0x8] sm:$0xff] (!%p113_p2)  ;;  %v434_v11 = vld [vmem:[%s830_s1 + $0x38] sm:$0xff] (!%p113_p2) }
   0x8   : > { %680 = vmatpush3.bf16.msra.mxu1 (!%p113_p2), %v679_v4  ;;  %v682_v12 = vpack.c.bf16 (!%p113_p2), %v148_v9, %v147_v8  ;;  %v688_v13 = vpack.c.bf16 (!%p113_p2), %v434_v11, %v433_v10 }
   0x9   : > { %686 = vmatpush3.bf16.msra.mxu0 (!%p113_p2), %v685_v6  ;;  %681 = vmatprep.subr.bf16.mxu1 (!%p113_p2), %v725_v3 }
   0xa   : > { %687 = vmatprep.subr.bf16.mxu0 (!%p113_p2), %v725_v3 }
   0xd   : > { %s833_s10 = smov (!%p134_p3, %s585_s10), 3 }
   0xe   : > { %s705_s27 = smul.u32 24, %s833_s10 }
  0x10   : > { %s785_s30 = scalar_lea.vmem %s829_s0, %s705_s27  ;;  %s143_s5 = scalar_lea.vmem %s831_s2, %s705_s27 }
  0x11   : > { %v149_v14 = vld [vmem:[%s785_s30 + $0x1] sm:$0xff]  ;;  %v150_v16 = vld [vmem:[%s785_s30 + $0x9] sm:$0xff]  ;;  %v151_v18 = vld [vmem:[%s785_s30 + $0x11] sm:$0x1] }
  0x12   : > { %v333_v15 = vld [vmem:[%s785_s30 + $0x2] sm:$0xff]  ;;  %631 = vmatmul.mubr.msk.f32.vlgmr.msra.gmra.mrb[0].mxu1 %vm154_vm1, %v149_v14  ;;  %v334_v17 = vld [vmem:[%s785_s30 + $0xa] sm:$0xff]  ;;  %v335_v19 = vld [vmem:[%s785_s30 + $0x12] sm:$0x1] }
  0x13   : > { %657 = vmatmul.mubr.msk.f32.vlgmr.msra.gmra.mrb[0].mxu0 %vm154_vm1, %v333_v15  ;;  %683 = vmatpush3.bf16.msra.mxu1 %v682_v12  ;;  %v144_v20 = vld [vmem:[%s785_s30] sm:$0xff]  ;;  %v145_v22 = vld [vmem:[%s785_s30 + $0x8] sm:$0xff]  ;;  %v146_v24 = vld [vmem:[%s785_s30 + $0x10] sm:$0x1] }
  0x14   : > { %689 = vmatpush3.bf16.msra.mxu0 %v688_v13  ;;  %633 = vmatprep.mubr.msk.f32.mxu1 %vm726_vm0, %v727_v7  ;;  %v430_v21 = vld [vmem:[%s785_s30 + $0x3] sm:$0xff]  ;;  %v431_v23 = vld [vmem:[%s785_s30 + $0xb] sm:$0xff]  ;;  %v432_v25 = vld [vmem:[%s785_s30 + $0x13] sm:$0x1] }
  0x15   : > { %659 = vmatprep.mubr.msk.f32.mxu0 %vm726_vm0, %v727_v7 }
  0x16   : > { %634 = vmatmul.mubr.msk.f32.gmra.mrb[2].mxu1 %vm154_vm1, %v150_v16 }
  0x17   : > { %660 = vmatmul.mubr.msk.f32.gmra.mrb[2].mxu0 %vm154_vm1, %v334_v17  ;;  %636 = vmatprep.mubr.msk.f32.mxu1 %vm726_vm0, %v727_v7 }
  0x18   : > { %662 = vmatprep.mubr.msk.f32.mxu0 %vm726_vm0, %v727_v7 }
  0x1a   : > { %637 = vmatmul.mubr.msk.f32.gmra.mrb[4].mxu1 %vm154_vm1, %v151_v18 }
  0x1b   : > { %663 = vmatmul.mubr.msk.f32.gmra.mrb[4].mxu0 %vm154_vm1, %v335_v19  ;;  %643 = vmatprep.mubr.msk.f32.mxu1 %vm726_vm0, %v727_v7 }
  0x1c   : > { %669 = vmatprep.mubr.msk.f32.mxu0 %vm726_vm0, %v727_v7 }
  0x1e   : > { %644 = vmatmul.mubr.msk.f32.vlgmr.msra.gmra.mrb[0].mxu1 %vm154_vm1, %v144_v20 }
  0x1f   : > { %670 = vmatmul.mubr.msk.f32.vlgmr.msra.gmra.mrb[0].mxu0 %vm154_vm1, %v430_v21  ;;  %646 = vmatprep.mubr.msk.f32.mxu1 %vm726_vm0, %v727_v7 }
  0x20   : > { %672 = vmatprep.mubr.msk.f32.mxu0 %vm726_vm0, %v727_v7 }
  0x22   : > { %647 = vmatmul.mubr.msk.f32.gmra.mrb[2].mxu1 %vm154_vm1, %v145_v22 }
  0x23   : > { %673 = vmatmul.mubr.msk.f32.gmra.mrb[2].mxu0 %vm154_vm1, %v431_v23  ;;  %649 = vmatprep.mubr.msk.f32.mxu1 %vm726_vm0, %v727_v7 }
  0x24   : > { %675 = vmatprep.mubr.msk.f32.mxu0 %vm726_vm0, %v727_v7 }
  0x26   : > { %650 = vmatmul.mubr.msk.f32.gmra.mrb[4].mxu1 %vm154_vm1, %v146_v24 }
  0x27   : > { %676 = vmatmul.mubr.msk.f32.gmra.mrb[4].mxu0 %vm154_vm1, %v432_v25 }
  0xf1   : > { %v319_v26 = vpop.f32.mrb[0].mxu1 }
  0xf2   : > { %v510_v27 = vpop.f32.mrb[0].mxu0  ;;  %v645_v29 = vpop.f32.mrb[1].mxu1 }
  0xf3   : > { %v690_v28 = vadd.f32 %v510_v27, %v319_v26  ;;  %v671_v30 = vpop.f32.mrb[1].mxu0 }
  0xf5   : > { %527 = vst [vmem:[%s143_s5] sm:$0xff] %v690_v28  ;;  %v324_v31 = vpop.f32.mrb[2].mxu1 }
  0xf6   : > { %v515_v32 = vpop.f32.mrb[2].mxu0  ;;  %v648_v34 = vpop.f32.mrb[3].mxu1 }
  0xf7   : > { %v691_v33 = vadd.f32 %v515_v32, %v324_v31  ;;  %v674_v35 = vpop.f32.mrb[3].mxu0 }
  0xf9   : > { %528 = vst [vmem:[%s143_s5 + $0x8] sm:$0xff] %v691_v33  ;;  %v329_v36 = vpop.f32.mrb[4].mxu1 }
  0xfa   : > { %v520_v37 = vpop.f32.mrb[4].mxu0  ;;  %v651_v39 = vpop.f32.mrb[5].mxu1 }
  0xfb   : > { %v692_v38 = vadd.f32 %v520_v37, %v329_v36  ;;  %v677_v40 = vpop.f32.mrb[5].mxu0 }
  0xfd   : > { %529 = vst [vmem:[%s143_s5 + $0x10] sm:$0x1] %v692_v38 }
  0xfe PF: > { %s12_s9 = sadd.s32 1, %s723_s9  }
  0xff   : > { %p9_p4 = scmp.ge.s32.totalorder %s12_s9, 6  }
 0x101   :  { %11 = sbr.rel (!%p9_p4) target bundleno = 1 (0x1), region = 58 }

// kernel: fourier_unit_forward.3
= control target key start
LH: loop header
LB: loop body
LE: loop exit
PB: predicated region body
PF: predicated region fallthrough
CT: control target
= control target key end

     0   :  { %s1401_s18 = smov 0   ;;  %s1754_s0 = inlined_call_operand.vmem [shape: f32[2,2,17,128], index: 0, kind: input, shape index: {}]   ;;  %s1755_s1 = inlined_call_operand.vmem [shape: f32[2,2,128], index: 1, kind: input, shape index: {}]   ;;  %s1756_s2 = inlined_call_operand.vmem [shape: f32[2,2,128], index: 2, kind: input, shape index: {}]   ;;  %s1757_s3 = inlined_call_operand.vmem [shape: f32[2,2,128,64], index: 3, kind: input, shape index: {}]   ;;  %s1758_s4 = inlined_call_operand.vmem [shape: f32[16,16], index: 4, kind: input, shape index: {}]   ;;  %s1759_s5 = inlined_call_operand.vmem [shape: f32[2,2,16,16], index: 5, kind: output, shape index: {}]  }
   0x1 LB: > { %s928_s19 = sadd.s32 4294967295, %s1363_s18   ;;  %p932_p0 = scmp.ge.s32.totalorder %s1363_s18, 1  ;;  %s1363_s18 = sphi %s1401_s18, %s15_s18  }
   0x2   : > { %p205_p1 = scmp.lt.s32.totalorder %s1363_s18, 3 }
   0x4   : > { %p206_p2 = pnand %p932_p0, %p205_p1 }
   0x5   : > { %v959_v0 = vld [vmem:[%s1757_s3 + $0x100] sm:$0xff] (!%p206_p2)  ;;  %v960_v1 = vld [vmem:[%s1757_s3 + $0x108] sm:$0xff] (!%p206_p2)  ;;  %v1365_v3 = vmov (!%p206_p2), 0.0|0.0   ;;  %v961_v6 = vld [vmem:[%s1757_s3 + $0x110] sm:$0xff] (!%p206_p2)  ;;  %p241_p3 = scmp.lt.s32.totalorder (!%p206_p2), %s928_s19, 1  ;;  %vm1366_vm0 = vmmov (!%p206_p2), 0   ;;  %v265_v18 = vlaneseq (!%p206_p2) }
   0x6   : > { %209 = sbr.rel (%p206_p2) target bundleno = 445 (0x1bd), region = 40  ;;  %v975_v2 = vld [vmem:[%s1757_s3 + $0x180] sm:$0xff] (!%p206_p2)  ;;  %1234 = vmatprep.subr.bf16.mxu0 (!%p206_p2), %v1365_v3  ;;  %1282 = vmatprep.subr.bf16.mxu1 (!%p206_p2), %v1365_v3  ;;  %v1235_v4 = vpack.c.bf16 (!%p206_p2), %v960_v1, %v959_v0  ;;  %v976_v5 = vld [vmem:[%s1757_s3 + $0x188] sm:$0xff] (!%p206_p2)  ;;  %v962_v7 = vld [vmem:[%s1757_s3 + $0x118] sm:$0xff] (!%p206_p2)  ;;  %v1367_v11 = vmov (!%p206_p2), 0.0   ;;  %vm693_vm1 = vcmask (!%p206_p2), 130048  }
   0x7   : > { %v1283_v8 = vpack.c.bf16 (!%p206_p2), %v976_v5, %v975_v2  ;;  %v977_v9 = vld [vmem:[%s1757_s3 + $0x190] sm:$0xff] (!%p206_p2)  ;;  %v978_v10 = vld [vmem:[%s1757_s3 + $0x198] sm:$0xff] (!%p206_p2)  ;;  %1102 = vmatprep.mubr.msk.f32.mxu0 (!%p206_p2), %vm1366_vm0, %v1367_v11  ;;  %1184 = vmatprep.mubr.msk.f32.mxu1 (!%p206_p2), %vm1366_vm0, %v1367_v11  ;;  %v1238_v12 = vpack.c.bf16 (!%p206_p2), %v962_v7, %v961_v6  ;;  %v963_v14 = vld [vmem:[%s1757_s3 + $0x120] sm:$0xff] (!%p206_p2)  ;;  %v1477_v25 = vshrl.u32 (!%p206_p2), %v265_v18, 7  ;;  %694 = vst.msk [vmem:[#allocation2] sm:$0xff] (!%p206_p2), %vm693_vm1, %v1367_v11  ;;  %vm696_vm2 = vcmask (!%p206_p2), 125952  }
   0x8   : > { %1236 = vmatpush3.bf16.msra.mxu0 (!%p206_p2), %v1235_v4  ;;  %v1286_v13 = vpack.c.bf16 (!%p206_p2), %v978_v10, %v977_v9  ;;  %v964_v15 = vld [vmem:[%s1757_s3 + $0x128] sm:$0xff] (!%p206_p2)  ;;  %v979_v16 = vld [vmem:[%s1757_s3 + $0x1a0] sm:$0xff] (!%p206_p2)  ;;  %v965_v21 = vld [vmem:[%s1757_s3 + $0x130] sm:$0xff] (!%p206_p2)  ;;  %695 = vst.msk [vmem:[#allocation2 + $0x8] sm:$0xff] (!%p206_p2), %vm693_vm1, %v1367_v11  ;;  %vm709_vm3 = vcmask (!%p206_p2), 122880   ;;  %s1369_s6 = smov (!%p206_p2), 96  }
   0x9   : > { %1284 = vmatpush3.bf16.msra.mxu1 (!%p206_p2), %v1283_v8  ;;  %1237 = vmatprep.subr.bf16.mxu0 (!%p206_p2), %v1365_v3  ;;  %v980_v17 = vld [vmem:[%s1757_s3 + $0x1a8] sm:$0xff] (!%p206_p2)  ;;  %v1241_v19 = vpack.c.bf16 (!%p206_p2), %v964_v15, %v963_v14  ;;  %v966_v22 = vld [vmem:[%s1757_s3 + $0x138] sm:$0xff] (!%p206_p2)  ;;  %v981_v23 = vld [vmem:[%s1757_s3 + $0x1b0] sm:$0xff] (!%p206_p2)  ;;  %v267_v33 = vsub.s32 (!%p206_p2), 0, %v1477_v25  ;;  %698 = vst.msk [vmem:[#allocation2 + $0x18] sm:$0xff] (!%p206_p2), %vm693_vm1, %v1367_v11  ;;  %s1370_s7 = smov (!%p206_p2), 80  }
   0xa   : > { %1285 = vmatprep.subr.bf16.mxu1 (!%p206_p2), %v1365_v3  ;;  %v1289_v20 = vpack.c.bf16 (!%p206_p2), %v980_v17, %v979_v16  ;;  %v982_v24 = vld [vmem:[%s1757_s3 + $0x1b8] sm:$0xff] (!%p206_p2)  ;;  %v1244_v26 = vpack.c.bf16 (!%p206_p2), %v966_v22, %v965_v21  ;;  %v967_v29 = vld [vmem:[%s1757_s3 + $0x140] sm:$0xff] (!%p206_p2)  ;;  %v968_v30 = vld [vmem:[%s1757_s3 + $0x148] sm:$0xff] (!%p206_p2)  ;;  %699 = vst.msk [vmem:[#allocation2 + $0x20] sm:$0xff] (!%p206_p2), %vm693_vm1, %v1367_v11 }
   0xb   : > { %v1292_v28 = vpack.c.bf16 (!%p206_p2), %v982_v24, %v981_v23  ;;  %v983_v31 = vld [vmem:[%s1757_s3 + $0x1c0] sm:$0xff] (!%p206_p2)  ;;  %v984_v32 = vld [vmem:[%s1757_s3 + $0x1c8] sm:$0xff] (!%p206_p2)  ;;  %v1247_v35 = vpack.c.bf16 (!%p206_p2), %v968_v30, %v967_v29  ;;  %v969_v37 = vld [vmem:[%s1757_s3 + $0x150] sm:$0xff] (!%p206_p2)  ;;  %697 = vst.msk [vmem:[#allocation2 + $0x10] sm:$0xf] (!%p206_p2), %vm696_vm2, %v1367_v11 }
   0xc   : > { %1239 = vmatpush3.bf16.msra.mxu0 (!%p206_p2), %v1238_v12  ;;  %v1295_v36 = vpack.c.bf16 (!%p206_p2), %v984_v32, %v983_v31  ;;  %v970_v38 = vld [vmem:[%s1757_s3 + $0x158] sm:$0xff] (!%p206_p2)  ;;  %v985_v39 = vld [vmem:[%s1757_s3 + $0x1d0] sm:$0xff] (!%p206_p2)  ;;  %v971_v45 = vld [vmem:[%s1757_s3 + $0x160] sm:$0xff] (!%p206_p2)  ;;  %700 = vst.msk [vmem:[#allocation2 + $0x28] sm:$0xf] (!%p206_p2), %vm696_vm2, %v1367_v11 }
   0xd   : > { %s1761_s19 = smov (!%p241_p3, %s928_s19), 1  ;;  %1287 = vmatpush3.bf16.msra.mxu1 %v1286_v13  ;;  %1240 = vmatprep.subr.bf16.mxu0 %v1365_v3  ;;  %v986_v40 = vld [vmem:[%s1757_s3 + $0x1d8] sm:$0xff]  ;;  %v1250_v42 = vpack.c.bf16 %v970_v38, %v969_v37  ;;  %v972_v46 = vld [vmem:[%s1757_s3 + $0x168] sm:$0xff]  ;;  %v987_v47 = vld [vmem:[%s1757_s3 + $0x1e0] sm:$0xff] }
   0xe   : > { %s934_s21 = sshll.u32 %s1761_s19, 1  ;;  %1288 = vmatprep.subr.bf16.mxu1 %v1365_v3  ;;  %s1342_s12 = smul.u32 48, %s1761_s19  ;;  %v1298_v44 = vpack.c.bf16 %v986_v40, %v985_v39  ;;  %v988_v48 = vld [vmem:[%s1757_s3 + $0x1e8] sm:$0xff]  ;;  %v1253_v50 = vpack.c.bf16 %v972_v46, %v971_v45  ;;  %v973_v54 = vld [vmem:[%s1757_s3 + $0x170] sm:$0xff]  ;;  %v974_v55 = vld [vmem:[%s1757_s3 + $0x178] sm:$0xff] }
   0xf   : > { %s1468_s28 = scalar_lea.vmem %s1755_s1, %s934_s21  ;;  %s1530_s13 = scalar_lea.vmem %s1756_s2, %s934_s21  ;;  %v1301_v53 = vpack.c.bf16 %v988_v48, %v987_v47  ;;  %v989_v56 = vld [vmem:[%s1757_s3 + $0x1f0] sm:$0xff]  ;;  %v990_v57 = vld [vmem:[%s1757_s3 + $0x1f8] sm:$0xff]  ;;  %v1256_v60 = vpack.c.bf16 %v974_v55, %v973_v54  ;;  %v282_v63 = vld [vmem:[%s1757_s3] sm:$0xff] }
  0x10   : > { %1242 = vmatpush3.bf16.msra.mxu0 %v1241_v19  ;;  %v315_v27 = vld [vmem:[%s1468_s28 + $0x1] sm:$0x1]  ;;  %s1506_s26 = scalar_lea.vmem %s1754_s0, %s1342_s12  ;;  %v1304_v62 = vpack.c.bf16 %v990_v57, %v989_v56  ;;  %v283_v0 = vld [vmem:[%s1757_s3 + $0x8] sm:$0xff]  ;;  %v284_v9 = vld [vmem:[%s1757_s3 + $0x10] sm:$0xff]  ;;  %s993_s8 = sshll.u32 %s1761_s19, 5 }
  0x11   : > { %1290 = vmatpush3.bf16.msra.mxu1 %v1289_v20  ;;  %1243 = vmatprep.subr.bf16.mxu0 %v1365_v3  ;;  %v321_v34 = vadd.f32 1.0, %v315_v27  ;;  %v955_v43 = vld [vmem:[%s1506_s26 + $0x18] sm:$0xff]  ;;  %v958_v51 = vld [vmem:[%s1530_s13 + $0x1] ss:$0 sm:$0xff]  ;;  %v957_v61 = vld [vmem:[%s1506_s26 + $0x28] sm:$0x1]  ;;  %v1259_v7 = vpack.c.bf16 %v283_v0, %v282_v63  ;;  %s258_s19 = scalar_lea.vmem %s1759_s5, %s993_s8 }
  0x12   : > { %1291 = vmatprep.subr.bf16.mxu1 %v1365_v3  ;;  %v956_v52 = vld [vmem:[%s1506_s26 + $0x20] sm:$0xff]  ;;  %v940_v2 = vld [vmem:[%s1757_s3 + $0x88] sm:$0xff]  ;;  %v285_v10 = vld [vmem:[%s1757_s3 + $0x18] sm:$0xff] }
  0x13   : > { %v325_v41 = vrot.slane %v321_v34, %v267_v33  ;;  %v939_v1 = vld [vmem:[%s1757_s3 + $0x80] sm:$0xff]  ;;  %v941_v12 = vld [vmem:[%s1757_s3 + $0x90] sm:$0xff]  ;;  %v942_v13 = vld [vmem:[%s1757_s3 + $0x98] sm:$0xff]  ;;  %v1262_v16 = vpack.c.bf16 %v285_v10, %v284_v9 }
  0x14   : > { %1245 = vmatpush3.bf16.msra.mxu0 %v1244_v26  ;;  %v1307_v8 = vpack.c.bf16 %v940_v2, %v939_v1  ;;  %v1310_v17 = vpack.c.bf16 %v942_v13, %v941_v12  ;;  %v286_v18 = vld [vmem:[%s1757_s3 + $0x20] sm:$0xff]  ;;  %v287_v19 = vld [vmem:[%s1757_s3 + $0x28] sm:$0xff]  ;;  %v288_v26 = vld [vmem:[%s1757_s3 + $0x30] sm:$0xff] }
  0x15   : > { %1293 = vmatpush3.bf16.msra.mxu1 %v1292_v28  ;;  %1246 = vmatprep.subr.bf16.mxu0 %v1365_v3  ;;  %v326_v49 = vmul.f32 %v955_v43, %v325_v41  ;;  %v327_v59 = vmul.f32 %v956_v52, %v325_v41  ;;  %v328_v6 = vmul.f32 %v957_v61, %v325_v41  ;;  %v943_v20 = vld [vmem:[%s1757_s3 + $0xa0] sm:$0xff]  ;;  %v944_v21 = vld [vmem:[%s1757_s3 + $0xa8] sm:$0xff]  ;;  %v289_v27 = vld [vmem:[%s1757_s3 + $0x38] sm:$0xff] }
  0x16   : > { %1294 = vmatprep.subr.bf16.mxu1 %v1365_v3  ;;  %v1265_v23 = vpack.c.bf16 %v287_v19, %v286_v18  ;;  %v1313_v24 = vpack.c.bf16 %v944_v21, %v943_v20  ;;  %v945_v28 = vld [vmem:[%s1757_s3 + $0xb0] sm:$0xff]  ;;  %v946_v29 = vld [vmem:[%s1757_s3 + $0xb8] sm:$0xff]  ;;  %v259_v30 = vld [vmem:[%s1468_s28] sm:$0x1]  ;;  %v1268_v31 = vpack.c.bf16 %v289_v27, %v288_v26 }
  0x17   : > { %v333_v58 = vadd.f32 %v958_v51, %v326_v49  ;;  %v334_v5 = vadd.f32 %v958_v51, %v327_v59  ;;  %v335_v15 = vadd.f32 %v958_v51, %v328_v6  ;;  %v1316_v32 = vpack.c.bf16 %v946_v29, %v945_v28  ;;  %v290_v34 = vld [vmem:[%s1757_s3 + $0x40] sm:$0xff]  ;;  %v948_v37 = vld [vmem:[%s1757_s3 + $0xc8] sm:$0xff]  ;;  %v292_v41 = vld [vmem:[%s1757_s3 + $0x50] sm:$0xff] }
  0x18   : > { %1248 = vmatpush3.bf16.msra.mxu0 %v1247_v35  ;;  %v291_v35 = vld [vmem:[%s1757_s3 + $0x48] sm:$0xff]  ;;  %v264_v38 = vadd.f32 1.0, %v259_v30  ;;  %v949_v43 = vld [vmem:[%s1757_s3 + $0xd0] sm:$0xff]  ;;  %v261_v46 = vld [vmem:[%s1506_s26] sm:$0xff] }
  0x19   : > { %1296 = vmatpush3.bf16.msra.mxu1 %v1295_v36  ;;  %1249 = vmatprep.subr.bf16.mxu0 %v1365_v3  ;;  %v336_v4 = vmax.f32 %v333_v58, 0.0  ;;  %v337_v14 = vmax.f32 %v334_v5, 0.0  ;;  %v338_v22 = vmax.f32 %v335_v15, 0.0  ;;  %v947_v36 = vld [vmem:[%s1757_s3 + $0xc0] sm:$0xff]  ;;  %v1271_v39 = vpack.c.bf16 %v291_v35, %v290_v34  ;;  %v262_v54 = vld [vmem:[%s1506_s26 + $0x8] sm:$0xff]  ;;  %v296_v56 = vld [vmem:[%s1757_s3 + $0x70] sm:$0xff] }
  0x1a   : > { %1297 = vmatprep.subr.bf16.mxu1 %v1365_v3  ;;  %v1319_v40 = vpack.c.bf16 %v948_v37, %v947_v36  ;;  %v268_v45 = vrot.slane %v264_v38, %v267_v33  ;;  %v294_v49 = vld [vmem:[%s1757_s3 + $0x60] sm:$0xff]  ;;  %v952_v33 = vld [vmem:[%s1757_s3 + $0xe8] sm:$0xff]  ;;  %v297_v57 = vld [vmem:[%s1757_s3 + $0x78] sm:$0xff] }
  0x1b   : > { %v951_v25 = vld [vmem:[%s1757_s3 + $0xe0] sm:$0xff]  ;;  %v953_v58 = vld [vmem:[%s1757_s3 + $0xf0] sm:$0xff]  ;;  %v954_v59 = vld [vmem:[%s1757_s3 + $0xf8] sm:$0xff] }
  0x1c   : > { %1251 = vmatpush3.bf16.msra.mxu0 %v1250_v42  ;;  %v293_v42 = vld [vmem:[%s1757_s3 + $0x58] sm:$0xff]  ;;  %v269_v51 = vmul.f32 %v268_v45, %v261_v46  ;;  %v938_v52 = vld [vmem:[%s1530_s13] ss:$0 sm:$0xff]  ;;  %v1325_v55 = vpack.c.bf16 %v952_v33, %v951_v25  ;;  %v270_v61 = vmul.f32 %v268_v45, %v262_v54  ;;  %v263_v63 = vld [vmem:[%s1506_s26 + $0x10] sm:$0x1]  ;;  %v1328_v0 = vpack.c.bf16 %v954_v59, %v953_v58  ;;  %s1368_s26 = smov 112  }
  0x1d   : > { %1299 = vmatpush3.bf16.msra.mxu1 %v1298_v44  ;;  %1252 = vmatprep.subr.bf16.mxu0 %v1365_v3  ;;  %v950_v44 = vld [vmem:[%s1757_s3 + $0xd8] sm:$0xff]  ;;  %v1274_v47 = vpack.c.bf16 %v293_v42, %v292_v41  ;;  %v713_v42 = vld [vmem:[#allocation2 + $0x11] sm:$0x1] }
  0x1e   : > { %1300 = vmatprep.subr.bf16.mxu1 %v1365_v3  ;;  %v1322_v48 = vpack.c.bf16 %v950_v44, %v949_v43  ;;  %v277_v2 = vadd.f32 %v938_v52, %v270_v61 }
  0x20   : > { %1254 = vmatpush3.bf16.msra.mxu0 %v1253_v50  ;;  %v295_v50 = vld [vmem:[%s1757_s3 + $0x68] sm:$0xff]  ;;  %v280_v5 = vmax.f32 %v277_v2, 0.0 }
  0x21   : > { %1302 = vmatpush3.bf16.msra.mxu1 %v1301_v53  ;;  %1255 = vmatprep.subr.bf16.mxu0 %v1365_v3  ;;  %v1277_v53 = vpack.c.bf16 %v295_v50, %v294_v49 }
  0x22   : > { %1303 = vmatprep.subr.bf16.mxu1 %v1365_v3 }
  0x24   : > { %1257 = vmatpush3.bf16.msra.mxu0 %v1256_v60  ;;  %v276_v60 = vadd.f32 %v938_v52, %v269_v51  ;;  %v734_v51 = vld [vmem:[#allocation2 + $0x12] sm:$0x1] }
  0x25   : > { %1305 = vmatpush3.bf16.msra.mxu1 %v1304_v62  ;;  %1258 = vmatprep.subr.bf16.mxu0 %v1365_v3  ;;  %v1280_v62 = vpack.c.bf16 %v297_v57, %v296_v56 }
  0x26   : > { %1306 = vmatprep.subr.bf16.mxu1 %v1365_v3  ;;  %v279_v1 = vmax.f32 %v276_v60, 0.0 }
  0x27   : > { %1103 = vmatmul.mubr.f32.vlgmr.msra.gmra.mrb[0].mxu0 %v336_v4 }
  0x28   : > { %1260 = vmatpush3.bf16.msra.mxu0 %v1259_v7  ;;  %1185 = vmatmul.mubr.f32.vlgmr.msra.gmra.mrb[0].mxu1 %v336_v4  ;;  %v271_v4 = vmul.f32 %v268_v45, %v263_v63  ;;  %v801_v63 = vld [vmem:[#allocation2 + $0x2a] sm:$0x1] }
  0x29   : > { %1308 = vmatpush3.bf16.msra.mxu1 %v1307_v8  ;;  %1261 = vmatprep.subr.bf16.mxu0 %v1365_v3  ;;  %v769_v8 = vld [vmem:[#allocation2 + $0x18] sm:$0xff] }
  0x2a   : > { %1309 = vmatprep.subr.bf16.mxu1 %v1365_v3  ;;  %1105 = vmatprep.mubr.msk.f32.mxu0 %vm1366_vm0, %v1367_v11  ;;  %v278_v6 = vadd.f32 %v938_v52, %v271_v4 }
  0x2b   : > { %1187 = vmatprep.mubr.msk.f32.mxu1 %vm1366_vm0, %v1367_v11  ;;  %1106 = vmatmul.mubr.f32.gmra.mrb[2].mxu0 %v337_v14 }
  0x2c   : > { %1263 = vmatpush3.bf16.msra.mxu0 %v1262_v16  ;;  %1188 = vmatmul.mubr.f32.gmra.mrb[2].mxu1 %v337_v14  ;;  %v281_v7 = vmax.f32 %v278_v6, 0.0  ;;  %v702_v16 = vld [vmem:[#allocation2 + $0x8] sm:$0xff] }
  0x2d   : > { %1311 = vmatpush3.bf16.msra.mxu1 %v1310_v17  ;;  %1264 = vmatprep.subr.bf16.mxu0 %v1365_v3  ;;  %v770_v17 = vld [vmem:[#allocation2 + $0x20] sm:$0xff] }
  0x2e   : > { %1312 = vmatprep.subr.bf16.mxu1 %v1365_v3  ;;  %1108 = vmatprep.mubr.msk.f32.mxu0 %vm1366_vm0, %v1367_v11 }
  0x2f   : > { %1190 = vmatprep.mubr.msk.f32.mxu1 %vm1366_vm0, %v1367_v11  ;;  %1109 = vmatmul.mubr.f32.gmra.mrb[4].mxu0 %v338_v22 }
  0x30   : > { %1266 = vmatpush3.bf16.msra.mxu0 %v1265_v23  ;;  %1191 = vmatmul.mubr.f32.gmra.mrb[4].mxu1 %v338_v22  ;;  %v703_v23 = vld [vmem:[#allocation2 + $0x10] sm:$0x1] }
  0x31   : > { %1314 = vmatpush3.bf16.msra.mxu1 %v1313_v24  ;;  %1267 = vmatprep.subr.bf16.mxu0 %v1365_v3  ;;  %v771_v24 = vld [vmem:[#allocation2 + $0x28] sm:$0x1] }
  0x32   : > { %1315 = vmatprep.subr.bf16.mxu1 %v1365_v3  ;;  %1143 = vmatprep.mubr.msk.f32.mxu0 %vm1366_vm0, %v1367_v11 }
  0x33   : > { %1225 = vmatprep.mubr.msk.f32.mxu1 %vm1366_vm0, %v1367_v11 }
  0x34   : > { %1269 = vmatpush3.bf16.msra.mxu0 %v1268_v31 }
  0x35   : > { %1317 = vmatpush3.bf16.msra.mxu1 %v1316_v32  ;;  %1270 = vmatprep.subr.bf16.mxu0 %v1365_v3 }
  0x36   : > { %1318 = vmatprep.subr.bf16.mxu1 %v1365_v3 }
  0x38   : > { %1272 = vmatpush3.bf16.msra.mxu0 %v1271_v39 }
  0x39   : > { %1320 = vmatpush3.bf16.msra.mxu1 %v1319_v40  ;;  %1273 = vmatprep.subr.bf16.mxu0 %v1365_v3 }
  0x3a   : > { %1321 = vmatprep.subr.bf16.mxu1 %v1365_v3 }
  0x3c   : > { %1275 = vmatpush3.bf16.msra.mxu0 %v1274_v47 }
  0x3d   : > { %1323 = vmatpush3.bf16.msra.mxu1 %v1322_v48  ;;  %1276 = vmatprep.subr.bf16.mxu0 %v1365_v3  ;;  %v780_v48 = vld [vmem:[#allocation2 + $0x29] sm:$0x1] }
  0x3e   : > { %1324 = vmatprep.subr.bf16.mxu1 %v1365_v3 }
  0x40   : > { %1278 = vmatpush3.bf16.msra.mxu0 %v1277_v53 }
  0x41   : > { %1326 = vmatpush3.bf16.msra.mxu1 %v1325_v55  ;;  %1279 = vmatprep.subr.bf16.mxu0 %v1365_v3 }
  0x42   : > { %1327 = vmatprep.subr.bf16.mxu1 %v1365_v3  ;;  %v701_v3 = vld [vmem:[#allocation2] sm:$0xff] }
  0x44   : > { %1281 = vmatpush3.bf16.msra.mxu0 %v1280_v62 }
  0x45   : > { %1329 = vmatpush3.bf16.msra.mxu1 %v1328_v0 }
  0x47   : > { %1144 = vmatmul.mubr.f32.vlgmr.msra.gmra.mrb[0].mxu0 %v279_v1 }
  0x48   : > { %1226 = vmatmul.mubr.f32.vlgmr.msra.gmra.mrb[0].mxu1 %v279_v1  ;;  %1146 = vmatprep.mubr.msk.f32.mxu0 %vm1366_vm0, %v1367_v11 }
  0x49   : > { %1228 = vmatprep.mubr.msk.f32.mxu1 %vm1366_vm0, %v1367_v11 }
  0x4b   : > { %1147 = vmatmul.mubr.f32.gmra.mrb[2].mxu0 %v280_v5 }
  0x4c   : > { %1229 = vmatmul.mubr.f32.gmra.mrb[2].mxu1 %v280_v5  ;;  %1149 = vmatprep.mubr.msk.f32.mxu0 %vm1366_vm0, %v1367_v11 }
  0x4d   : > { %1231 = vmatprep.mubr.msk.f32.mxu1 %vm1366_vm0, %v1367_v11 }
  0x4f   : > { %1150 = vmatmul.mubr.f32.gmra.mrb[4].mxu0 %v281_v7 }
  0x50   : > { %1232 = vmatmul.mubr.f32.gmra.mrb[4].mxu1 %v281_v7 }
 0x11a   : > { %v502_v9 = vpop.f32.mrb[0].mxu0 }
 0x11b   : > { %v704_v10 = vadd.f32 %v701_v3, %v502_v9  ;;  %v679_v12 = vpop.f32.mrb[0].mxu1  ;;  %717 = vrot.lane.b32.xlu0 %v502_v9, %s1368_s26  ;;  %v1145_v13 = vpop.f32.mrb[1].mxu0 }
 0x11c   : > { %v772_v14 = vadd.f32 %v769_v8, %v679_v12  ;;  %784 = vrot.lane.b32.xlu1 %v679_v12, %s1368_s26  ;;  %v1227_v15 = vpop.f32.mrb[1].mxu1 }
 0x11d   : > { %707 = vst.msk [vmem:[#allocation2] sm:$0xff] %vm693_vm1, %v704_v10  ;;  %v752_v10 = vld [vmem:[#allocation2 + $0x13] sm:$0x1] }
 0x11e   : > { %775 = vst.msk [vmem:[#allocation2 + $0x18] sm:$0xff] %vm693_vm1, %v772_v14  ;;  %v507_v11 = vpop.f32.mrb[2].mxu0 }
 0x11f   : > { %v705_v18 = vadd.f32 %v702_v16, %v507_v11  ;;  %v684_v19 = vpop.f32.mrb[2].mxu1  ;;  %719 = vrot.lane.b32.xlu0 %v507_v11, %s1368_s26  ;;  %v1148_v20 = vpop.f32.mrb[3].mxu0 }
 0x120   : > { %v773_v21 = vadd.f32 %v770_v17, %v684_v19  ;;  %v1230_v22 = vpop.f32.mrb[3].mxu1  ;;  %v840_v20 = vld [vmem:[%s1758_s4 + $0x8] sm:$0xff] }
 0x121   : > { %708 = vst.msk [vmem:[#allocation2 + $0x8] sm:$0xff] %vm693_vm1, %v705_v18 }
 0x122   : > { %776 = vst.msk [vmem:[#allocation2 + $0x20] sm:$0xff] %vm693_vm1, %v773_v21  ;;  %v512_v26 = vpop.f32.mrb[4].mxu0 }
 0x123   : > { %v706_v27 = vadd.f32 %v703_v23, %v512_v26  ;;  %v689_v28 = vpop.f32.mrb[4].mxu1  ;;  %786 = vrot.lane.b32.xlu0 %v684_v19, %s1368_s26  ;;  %721 = vrot.lane.b32.xlu1 %v512_v26, %s1368_s26  ;;  %v1151_v29 = vpop.f32.mrb[5].mxu0 }
 0x124   : > { %v774_v30 = vadd.f32 %v771_v24, %v689_v28  ;;  %v1233_v31 = vpop.f32.mrb[5].mxu1 }
 0x125   : > { %710 = vst.msk [vmem:[#allocation2 + $0x10] sm:$0x1] %vm709_vm3, %v706_v27 }
 0x126   : > { %777 = vst.msk [vmem:[#allocation2 + $0x28] sm:$0x1] %vm709_vm3, %v774_v30 }
 0x127   : > { %735 = vrot.lane.b32.xlu0 %v502_v9, %s1369_s6  ;;  %788 = vrot.lane.b32.xlu1 %v689_v28, %s1368_s26 }
 0x128   : > { %v711_v34 = vld [vmem:[#allocation2 + $0x1] sm:$0xff] }
 0x129   : > { %v778_v36 = vld [vmem:[#allocation2 + $0x19] sm:$0xff] }
 0x12b   : > { %739 = vrot.lane.b32.xlu0 %v512_v26, %s1369_s6  ;;  %737 = vrot.lane.b32.xlu1 %v507_v11, %s1369_s6 }
 0x12c   : > { %v712_v40 = vld [vmem:[#allocation2 + $0x9] sm:$0xff] }
 0x12d   : > { %v779_v43 = vld [vmem:[#allocation2 + $0x21] sm:$0xff] }
 0x12f   : > { %804 = vrot.lane.b32.xlu0 %v684_v19, %s1369_s6  ;;  %802 = vrot.lane.b32.xlu1 %v679_v12, %s1369_s6 }
 0x133   : > { %753 = vrot.lane.b32.xlu0 %v502_v9, %s1370_s7  ;;  %806 = vrot.lane.b32.xlu1 %v689_v28, %s1369_s6 }
 0x137   : > { %820 = vrot.lane.b32.xlu0 %v679_v12, %s1370_s7  ;;  %755 = vrot.lane.b32.xlu1 %v507_v11, %s1370_s7  ;;  %v819_v11 = vld [vmem:[#allocation2 + $0x2b] sm:$0x1] }
 0x13b   : > { %757 = vrot.lane.b32.xlu0 %v512_v26, %s1370_s7  ;;  %822 = vrot.lane.b32.xlu1 %v684_v19, %s1370_s7  ;;  %v839_v19 = vld [vmem:[%s1758_s4] sm:$0xff] }
 0x13f   : > { %824 = vrot.lane.b32.xlu1 %v689_v28, %s1370_s7 }
 0x18d   : > { %v718_v32 = vpop.permute.xlu0 %717 }
 0x18e   : > { %v785_v35 = vpop.permute.xlu1 %784  ;;  %v726_v37 = vadd.f32 %v718_v32, %v711_v34 }
 0x18f   : > { %v793_v38 = vadd.f32 %v785_v35, %v778_v36 }
 0x190   : > { %729 = vst.msk [vmem:[#allocation2 + $0x1] sm:$0xff] %vm693_vm1, %v726_v37 }
 0x191   : > { %796 = vst.msk [vmem:[#allocation2 + $0x19] sm:$0xff] %vm693_vm1, %v793_v38  ;;  %v720_v39 = vpop.permute.xlu0 %719 }
 0x192   : > { %v727_v41 = vadd.f32 %v720_v39, %v712_v40 }
 0x194   : > { %730 = vst.msk [vmem:[#allocation2 + $0x9] sm:$0xff] %vm693_vm1, %v727_v41 }
 0x195   : > { %v787_v44 = vpop.permute.xlu0 %786  ;;  %v722_v45 = vpop.permute.xlu1 %721 }
 0x196   : > { %v794_v46 = vadd.f32 %v787_v44, %v779_v43  ;;  %v728_v47 = vadd.f32 %v722_v45, %v713_v42 }
 0x198   : > { %797 = vst.msk [vmem:[#allocation2 + $0x21] sm:$0xff] %vm693_vm1, %v794_v46 }
 0x199   : > { %731 = vst.msk [vmem:[#allocation2 + $0x11] sm:$0x1] %vm709_vm3, %v728_v47  ;;  %v736_v49 = vpop.permute.xlu0 %735  ;;  %v789_v50 = vpop.permute.xlu1 %788 }
 0x19a   : > { %v795_v25 = vadd.f32 %v789_v50, %v780_v48 }
 0x19b   : > { %v732_v33 = vld [vmem:[#allocation2 + $0x2] sm:$0xff] }
 0x19c   : > { %v744_v52 = vadd.f32 %v736_v49, %v732_v33  ;;  %798 = vst.msk [vmem:[#allocation2 + $0x29] sm:$0x1] %vm709_vm3, %v795_v25 }
 0x19d   : > { %v740_v53 = vpop.permute.xlu0 %739  ;;  %v738_v54 = vpop.permute.xlu1 %737 }
 0x19e   : > { %747 = vst.msk [vmem:[#allocation2 + $0x2] sm:$0xff] %vm693_vm1, %v744_v52  ;;  %v746_v55 = vadd.f32 %v740_v53, %v734_v51 }
 0x19f   : > { %v799_v59 = vld [vmem:[#allocation2 + $0x1a] sm:$0xff] }
 0x1a0   : > { %v733_v56 = vld [vmem:[#allocation2 + $0xa] sm:$0xff]  ;;  %749 = vst.msk [vmem:[#allocation2 + $0x12] sm:$0x1] %vm709_vm3, %v746_v55 }
 0x1a1   : > { %v745_v57 = vadd.f32 %v738_v54, %v733_v56  ;;  %v805_v58 = vpop.permute.xlu0 %804  ;;  %v803_v60 = vpop.permute.xlu1 %802 }
 0x1a2   : > { %v811_v61 = vadd.f32 %v803_v60, %v799_v59 }
 0x1a3   : > { %748 = vst.msk [vmem:[#allocation2 + $0xa] sm:$0xff] %vm693_vm1, %v745_v57  ;;  %v800_v62 = vld [vmem:[#allocation2 + $0x22] sm:$0xff] }
 0x1a4   : > { %v812_v0 = vadd.f32 %v805_v58, %v800_v62  ;;  %814 = vst.msk [vmem:[#allocation2 + $0x1a] sm:$0xff] %vm693_vm1, %v811_v61 }
 0x1a5   : > { %v754_v1 = vpop.permute.xlu0 %753  ;;  %v807_v2 = vpop.permute.xlu1 %806 }
 0x1a6   : > { %815 = vst.msk [vmem:[#allocation2 + $0x22] sm:$0xff] %vm693_vm1, %v812_v0  ;;  %v813_v4 = vadd.f32 %v807_v2, %v801_v63 }
 0x1a8   : > { %816 = vst.msk [vmem:[#allocation2 + $0x2a] sm:$0x1] %vm709_vm3, %v813_v4 }
 0x1a9   : > { %v821_v6 = vpop.permute.xlu0 %820  ;;  %v756_v7 = vpop.permute.xlu1 %755 }
 0x1aa   : > { %v750_v5 = vld [vmem:[#allocation2 + $0x3] sm:$0xff]  ;;  %v751_v3 = vld [vmem:[#allocation2 + $0xb] sm:$0xff] }
 0x1ab   : > { %v762_v8 = vadd.f32 %v754_v1, %v750_v5  ;;  %v763_v9 = vadd.f32 %v756_v7, %v751_v3 }
 0x1ad   : > { %765 = vst.msk [vmem:[#allocation2 + $0x3] sm:$0xff] %vm693_vm1, %v762_v8  ;;  %766 = vst.msk [vmem:[#allocation2 + $0xb] sm:$0xff] %vm693_vm1, %v763_v9  ;;  %v817_v12 = vld [vmem:[#allocation2 + $0x1b] sm:$0xff]  ;;  %v758_v13 = vpop.permute.xlu0 %757  ;;  %v823_v14 = vpop.permute.xlu1 %822 }
 0x1ae   : > { %v829_v15 = vadd.f32 %v821_v6, %v817_v12  ;;  %v764_v16 = vadd.f32 %v758_v13, %v752_v10 }
 0x1af   : > { %v818_v17 = vld [vmem:[#allocation2 + $0x23] sm:$0xff] }
 0x1b0   : > { %832 = vst.msk [vmem:[#allocation2 + $0x1b] sm:$0xff] %vm693_vm1, %v829_v15  ;;  %v830_v18 = vadd.f32 %v823_v14, %v818_v17 }
 0x1b1   : > { %767 = vst.msk [vmem:[#allocation2 + $0x13] sm:$0x1] %vm709_vm3, %v764_v16  ;;  %v825_v21 = vpop.permute.xlu1 %824 }
 0x1b2   : > { %833 = vst.msk [vmem:[#allocation2 + $0x23] sm:$0xff] %vm693_vm1, %v830_v18  ;;  %v831_v22 = vadd.f32 %v825_v21, %v819_v11 }
 0x1b4   : > { %v835_v23 = vld [vmem:[#allocation2 + $0x2] sm:$0xff]  ;;  %v836_v24 = vld [vmem:[#allocation2 + $0xa] sm:$0xff]  ;;  %834 = vst.msk [vmem:[#allocation2 + $0x2b] sm:$0x1] %vm709_vm3, %v831_v22 }
 0x1b5   : > { %v841_v26 = vmul.f32 %v839_v19, %v835_v23  ;;  %v842_v27 = vmul.f32 %v840_v20, %v836_v24 }
 0x1b7   : > { %845 = vst.msk [vmem:[%s258_s19] sm:$0xff] %vm693_vm1, %v841_v26  ;;  %846 = vst.msk [vmem:[%s258_s19 + $0x8] sm:$0xff] %vm693_vm1, %v842_v27  ;;  %v837_v28 = vld [vmem:[#allocation2 + $0x1a] sm:$0xff] }
 0x1b8   : > { %v843_v29 = vmul.f32 %v839_v19, %v837_v28 }
 0x1b9   : > { %v838_v30 = vld [vmem:[#allocation2 + $0x22] sm:$0xff] }
 0x1ba   : > { %847 = vst.msk [vmem:[%s258_s19 + $0x10] sm:$0xff] %vm693_vm1, %v843_v29  ;;  %v844_v31 = vmul.f32 %v840_v20, %v838_v30 }
 0x1bc   : > { %848 = vst.msk [vmem:[%s258_s19 + $0x18] sm:$0xff] %vm693_vm1, %v844_v31 }
 0x1bd PF: > { %s15_s18 = sadd.s32 1, %s1363_s18  }
 0x1be   : > { %p12_p4 = scmp.ge.s32.totalorder %s15_s18, 4  }
 0x1c0   :  { %14 = sbr.rel (!%p12_p4) target bundleno = 1 (0x1), region = 81 }

</bundles_post_ra>
